<compile_context>
chip_gen: v7x
topology: tpu7x:2x2x1
jax: 0.10.0
libtpu: 0.0.40
codegen_flags: <defaults>
</compile_context>

<pallas_src>
import jax
import jax.numpy as jnp
from jax import lax
from jax.experimental import pallas as pl
from jax.experimental.pallas import tpu as pltpu  # noqa: F401  (imported per template)

# ---- model hyper-parameters (small, consistent with the module) ----
N_HEADS = 4
EMBED_DIM = 32
HEAD_DIM = 8
BATCH = 2
SEQ = 8
LN_EPS = 1e-5                     # nn.LayerNorm default

HD = N_HEADS * HEAD_DIM           # concatenated-heads width (== EMBED_DIM here)
FF = 4 * EMBED_DIM                # feed-forward hidden width (== 128)
BS = BATCH * SEQ                  # flattened tokens (16)
BHS = N_HEADS * BATCH * SEQ       # block-diagonal key/value rows (64)

# packed weight-slab column offsets (all 128-lane aligned)
_Q0, _K0, _V0, _P0, _W1_0, _W2_0 = 0, 128, 256, 384, 512, 640
_WA_COLS = 768


def _layernorm(h, w, b):
    mu = jnp.mean(h, axis=-1, keepdims=True)
    var = jnp.mean((h - mu) ** 2, axis=-1, keepdims=True)
    return (h - mu) * lax.rsqrt(var + LN_EPS) * w + b


def block_kernel(x_ref, wa_ref, cst_ref, o_ref):
    x = x_ref[...]                                     # (BS, E)

    # ---- unpack constant slab (biases / LN params / masks) ----
    vecs = cst_ref[0:8, :]                             # (8, 128)
    bp = vecs[0, :EMBED_DIM]
    ln1w = vecs[1, :EMBED_DIM]
    ln1b = vecs[2, :EMBED_DIM]
    b1 = vecs[3, :]                                    # (FF,)
    b2 = vecs[4, :EMBED_DIM]
    ln2w = vecs[5, :EMBED_DIM]
    ln2b = vecs[6, :EMBED_DIM]
    cb = cst_ref[8:8 + BS, :BHS]                       # (BS, BHS) cross-batch mask
    hm = cst_ref[8 + BS:8 + BS + BHS, :HD]             # (BHS, HD) head block-diag mask

    # ---- fused QKV projection (sqrt(head_dim) scale folded into packed wq) ----
    qkv = jnp.dot(x, wa_ref[:, :_P0], preferred_element_type=jnp.float32)  # (BS, 384)
    q = qkv[:, _Q0:_Q0 + HD]                           # 128-aligned views
    k = qkv[:, _K0:_K0 + HD]
    v = qkv[:, _V0:_V0 + HD]

    # ---- batch+head block-diagonal K/V slabs, row order (head, batch, seq) ----
    k_blk = jnp.concatenate([k, k, k, k], axis=0) * hm        # (BHS, HD)
    v_blk = jnp.concatenate([v, v, v, v], axis=0) * hm        # (BHS, HD)

    # ---- attention: all batches AND heads in one scores + one ctx matmul ----
    # scores[i, r] = q_i . k_{head(r),pos(r)}  (contract feature dims)
    s = lax.dot_general(q, k_blk, (((1,), (1,)), ((), ())),
                        preferred_element_type=jnp.float32)   # (BS, BHS)
    # subtracting the per-row global max is exact (cancels per head segment)
    s = s - jnp.max(s, axis=-1, keepdims=True)
    # e <= 1 after the max subtraction, so zeroing cross-batch columns is safe
    e = jnp.exp(s) * cb                                        # (BS, BHS)

    denom = jnp.dot(e, hm, preferred_element_type=jnp.float32)     # (BS, HD) per-head sums
    ctx = jnp.dot(e, v_blk, preferred_element_type=jnp.float32)    # (BS, HD) heads concatenated
    attn = ctx * pl.reciprocal(denom, approx=True)

    # ---- projection + residual + LayerNorm 1 ----
    proj = jnp.dot(attn, wa_ref[:, _P0:_P0 + EMBED_DIM],
                   preferred_element_type=jnp.float32) + bp
    h1 = _layernorm(x + proj, ln1w, ln1b)

    # ---- FeedForward + residual + LayerNorm 2 (w2 packed transposed, lane dense) ----
    f = jnp.maximum(jnp.dot(h1, wa_ref[:, _W1_0:_W1_0 + FF],
                            preferred_element_type=jnp.float32) + b1, 0.0)
    f = lax.dot_general(f, wa_ref[:, _W2_0:_W2_0 + FF], (((1,), (1,)), ((), ())),
                        preferred_element_type=jnp.float32) + b2
    o_ref[...] = _layernorm(h1 + f, ln2w, ln2b)


def pack_params(p):
    """Pack the 13 small operands into 2 slabs. Call ONCE at init (hoisted out
    of the forward path); the returned slabs are reused on every call."""
    assert p["wp"].shape[0] == EMBED_DIM, "packing assumes n_heads*head_dim == embed_dim"
    scale = HEAD_DIM ** 0.5        # reference multiplies logits by sqrt(head_dim)

    def pad_cols(w):
        return jnp.pad(w, ((0, 0), (0, 128 - w.shape[1])))

    # (E, 768) weight slab; every region starts on a 128-lane boundary
    wa = jnp.concatenate([
        pad_cols(p["wq"] * scale),     # cols   0:128 (q weights in 0:32)
        pad_cols(p["wk"]),             # cols 128:256
        pad_cols(p["wv"]),             # cols 256:384
        pad_cols(p["wp"]),             # cols 384:512
        p["w1"],                       # cols 512:640
        p["w2"].T,                     # cols 640:768 (lane-dense (E, FF))
    ], axis=1)

    def row(vv):
        return jnp.pad(vv, (0, 128 - vv.shape[0]))

    vec = jnp.stack([row(p["bp"]), row(p["ln1w"]), row(p["ln1b"]),
                     p["b1"], row(p["b2"]), row(p["ln2w"]), row(p["ln2b"]),
                     jnp.zeros((128,), jnp.float32)], axis=0)        # (8, 128)

    # cross-batch mask: cb[i, r] = 1 iff batch(query i) == batch(key-row r)
    qb = jnp.arange(BS)[:, None] // SEQ
    kb = (jnp.arange(BHS)[None, :] // SEQ) % BATCH
    cb = jnp.pad((qb == kb).astype(jnp.float32), ((0, 0), (0, 128 - BHS)))   # (16,128)

    # head block-diagonal mask: hm[r, c] = 1 iff head(row r) == head(col c)
    rh = jnp.arange(BHS)[:, None] // (BATCH * SEQ)
    ch = jnp.arange(HD)[None, :] // HEAD_DIM
    hm = jnp.pad((rh == ch).astype(jnp.float32), ((0, 0), (0, 128 - HD)))    # (64,128)

    cst = jnp.concatenate([vec, cb, hm], axis=0)                     # (88, 128)
    return wa, cst


@jax.jit
def block_forward(x, wa, cst):
    """x: (B, S, E) float32. wa/cst: cached slabs from pack_params()."""
    B, S, E = x.shape
    out = pl.pallas_call(
        block_kernel,
        out_shape=jax.ShapeDtypeStruct((B * S, E), jnp.float32),
    )(x.reshape(B * S, E), wa, cst)
    return out.reshape(B, S, E)


def make_params(key):
    """Synthetic parameters matching the PyTorch module shapes.

    nn.Linear(in, out) stores (out, in); here we keep pre-transposed (in, out)
    matrices so the kernel computes x @ W.  Per-head q/k/v weights are
    concatenated along the output dim in head order (matches torch.cat order).
    q/k/v have no bias (bias=False in AttentionHead); project/fc1/fc2 do.
    """
    ks = jax.random.split(key, 12)
    s = 0.05
    E, H, D = EMBED_DIM, N_HEADS, HEAD_DIM
    return {
        "wq": s * jax.random.normal(ks[0], (E, H * D), jnp.float32),
        "wk": s * jax.random.normal(ks[1], (E, H * D), jnp.float32),
        "wv": s * jax.random.normal(ks[2], (E, H * D), jnp.float32),
        "wp": s * jax.random.normal(ks[3], (H * D, E), jnp.float32),
        "bp": s * jax.random.normal(ks[4], (E,), jnp.float32),
        "w1": s * jax.random.normal(ks[5], (E, 4 * E), jnp.float32),
        "b1": s * jax.random.normal(ks[6], (4 * E,), jnp.float32),
        "w2": s * jax.random.normal(ks[7], (4 * E, E), jnp.float32),
        "b2": s * jax.random.normal(ks[8], (E,), jnp.float32),
        "ln1w": 1.0 + 0.1 * jax.random.normal(ks[9], (E,), jnp.float32),
        "ln1b": 0.1 * jax.random.normal(ks[10], (E,), jnp.float32),
        "ln2w": 1.0 + 0.1 * jax.random.normal(ks[11], (E,), jnp.float32),
        "ln2b": jnp.zeros((E,), jnp.float32),
    }


def block_reference(x, p):
    """Pure-JAX reference replicating the PyTorch forward semantics."""
    q = x @ p["wq"]
    k = x @ p["wk"]
    v = x @ p["wv"]
    outs = []
    for h in range(N_HEADS):
        sl = slice(h * HEAD_DIM, (h + 1) * HEAD_DIM)
        qh, kh, vh = q[..., sl], k[..., sl], v[..., sl]
        w = jnp.einsum("bqd,bkd->bqk", qh, kh) * (HEAD_DIM ** 0.5)
        w = jax.nn.softmax(w, axis=-1)
        outs.append(jnp.einsum("bqk,bkd->bqd", w, vh))
    attn = jnp.concatenate(outs, axis=-1)
    proj = attn @ p["wp"] + p["bp"]

    def ln(h_, w_, b_):
        mu = jnp.mean(h_, axis=-1, keepdims=True)
        var = jnp.mean((h_ - mu) ** 2, axis=-1, keepdims=True)
        return (h_ - mu) / jnp.sqrt(var + LN_EPS) * w_ + b_

    h1 = ln(x + proj, p["ln1w"], p["ln1b"])
    f = jnp.maximum(h1 @ p["w1"] + p["b1"], 0.0) @ p["w2"] + p["b2"]
    return ln(h1 + f, p["ln2w"], p["ln2b"])


if __name__ == "__main__":
    key = jax.random.PRNGKey(0)
    kx, kp = jax.random.split(key)
    x = jax.random.normal(kx, (BATCH, SEQ, EMBED_DIM), jnp.float32)
    params = make_params(kp)

    # one-time packing (hoisted out of the per-call path)
    wa, cst = jax.block_until_ready(pack_params(params))

    out = jax.block_until_ready(block_forward(x, wa, cst))
    ref = block_reference(x, params)

    assert out.shape == (BATCH, SEQ, EMBED_DIM)
    # tolerance covers the EUP approximate reciprocal used for the softmax denom
    assert jnp.allclose(out, ref, atol=2e-3, rtol=2e-3), "mismatch vs reference"

    print("KERNEL_OK")
</pallas_src>

<mosaic_0001>
module attributes {stable_mosaic.version = 11 : i64} {
  func.func @block_kernel(%arg0: memref<16x32xf32, #tpu.memory_space<vmem>>, %arg1: memref<32x768xf32, #tpu.memory_space<vmem>>, %arg2: memref<88x128xf32, #tpu.memory_space<vmem>>, %arg3: memref<16x32xf32, #tpu.memory_space<vmem>>) attributes {dimension_semantics = [], scalar_prefetch = 0 : i64, scratch_operands = 0 : i64, tpu.core_type = #tpu.core_type<tc>} {
    %c0 = arith.constant 0 : index
    %c0_0 = arith.constant 0 : index
    %0 = vector.load %arg0[%c0, %c0_0] : memref<16x32xf32, #tpu.memory_space<vmem>>, vector<16x32xf32>
    %c0_1 = arith.constant 0 : index
    %c0_2 = arith.constant 0 : index
    %1 = vector.load %arg2[%c0_1, %c0_2] : memref<88x128xf32, #tpu.memory_space<vmem>>, vector<8x128xf32>
    %2 = vector.extract_strided_slice %1 {offsets = [0, 0], sizes = [1, 32], strides = [1, 1]} : vector<8x128xf32> to vector<1x32xf32>
    %3 = vector.shape_cast %2 : vector<1x32xf32> to vector<32xf32>
    %4 = vector.extract_strided_slice %1 {offsets = [1, 0], sizes = [1, 32], strides = [1, 1]} : vector<8x128xf32> to vector<1x32xf32>
    %5 = vector.shape_cast %4 : vector<1x32xf32> to vector<32xf32>
    %6 = vector.extract_strided_slice %1 {offsets = [2, 0], sizes = [1, 32], strides = [1, 1]} : vector<8x128xf32> to vector<1x32xf32>
    %7 = vector.shape_cast %6 : vector<1x32xf32> to vector<32xf32>
    %8 = vector.extract_strided_slice %1 {offsets = [3, 0], sizes = [1, 128], strides = [1, 1]} : vector<8x128xf32> to vector<1x128xf32>
    %9 = vector.shape_cast %8 : vector<1x128xf32> to vector<128xf32>
    %10 = vector.extract_strided_slice %1 {offsets = [4, 0], sizes = [1, 32], strides = [1, 1]} : vector<8x128xf32> to vector<1x32xf32>
    %11 = vector.shape_cast %10 : vector<1x32xf32> to vector<32xf32>
    %12 = vector.extract_strided_slice %1 {offsets = [5, 0], sizes = [1, 32], strides = [1, 1]} : vector<8x128xf32> to vector<1x32xf32>
    %13 = vector.shape_cast %12 : vector<1x32xf32> to vector<32xf32>
    %14 = vector.extract_strided_slice %1 {offsets = [6, 0], sizes = [1, 32], strides = [1, 1]} : vector<8x128xf32> to vector<1x32xf32>
    %15 = vector.shape_cast %14 : vector<1x32xf32> to vector<32xf32>
    %c8 = arith.constant 8 : index
    %c0_3 = arith.constant 0 : index
    %16 = vector.load %arg2[%c8, %c0_3] : memref<88x128xf32, #tpu.memory_space<vmem>>, vector<16x64xf32>
    %c24 = arith.constant 24 : index
    %c0_4 = arith.constant 0 : index
    %17 = vector.load %arg2[%c24, %c0_4] : memref<88x128xf32, #tpu.memory_space<vmem>>, vector<64x32xf32>
    %c0_5 = arith.constant 0 : index
    %c0_6 = arith.constant 0 : index
    %18 = vector.load %arg1[%c0_5, %c0_6] : memref<32x768xf32, #tpu.memory_space<vmem>>, vector<32x384xf32>
    %cst = arith.constant dense<0.000000e+00> : vector<16x384xf32>
    %19 = tpu.matmul %0, %18, %cst {dimension_numbers = #tpu.dot_dimension_numbers<[1], [0], [0], [1], [0, 0, 1, 1], [], []>} : vector<16x32xf32>, vector<32x384xf32>, vector<16x384xf32> -> vector<16x384xf32>
    %20 = vector.extract_strided_slice %19 {offsets = [0, 0], sizes = [16, 32], strides = [1, 1]} : vector<16x384xf32> to vector<16x32xf32>
    %21 = vector.extract_strided_slice %19 {offsets = [0, 128], sizes = [16, 32], strides = [1, 1]} : vector<16x384xf32> to vector<16x32xf32>
    %22 = vector.extract_strided_slice %19 {offsets = [0, 256], sizes = [16, 32], strides = [1, 1]} : vector<16x384xf32> to vector<16x32xf32>
    %23 = tpu.concatenate %21, %21, %21, %21 in 0 : vector<16x32xf32>, vector<16x32xf32>, vector<16x32xf32>, vector<16x32xf32> -> vector<64x32xf32>
    %24 = arith.mulf %23, %17 : vector<64x32xf32>
    %25 = tpu.concatenate %22, %22, %22, %22 in 0 : vector<16x32xf32>, vector<16x32xf32>, vector<16x32xf32>, vector<16x32xf32> -> vector<64x32xf32>
    %26 = arith.mulf %25, %17 : vector<64x32xf32>
    %cst_7 = arith.constant dense<0.000000e+00> : vector<16x64xf32>
    %27 = tpu.matmul %20, %24, %cst_7 {dimension_numbers = #tpu.dot_dimension_numbers<[1], [1], [0], [0], [0, 0, 1, 0], [], []>} : vector<16x32xf32>, vector<64x32xf32>, vector<16x64xf32> -> vector<16x64xf32>
    %cst_8 = arith.constant dense<0xFF800000> : vector<16xf32>
    %28 = vector.multi_reduction <maximumf>, %27, %cst_8 [1] : vector<16x64xf32> to vector<16xf32>
    %29 = vector.shape_cast %28 : vector<16xf32> to vector<16x1xf32>
    %30 = vector.broadcast %29 : vector<16x1xf32> to vector<16x64xf32>
    %31 = arith.subf %27, %30 : vector<16x64xf32>
    %32 = math.exp %31 : vector<16x64xf32>
    %33 = arith.mulf %32, %16 : vector<16x64xf32>
    %cst_9 = arith.constant dense<0.000000e+00> : vector<16x32xf32>
    %34 = tpu.matmul %33, %17, %cst_9 {dimension_numbers = #tpu.dot_dimension_numbers<[1], [0], [0], [1], [0, 0, 1, 1], [], []>} : vector<16x64xf32>, vector<64x32xf32>, vector<16x32xf32> -> vector<16x32xf32>
    %cst_10 = arith.constant dense<0.000000e+00> : vector<16x32xf32>
    %35 = tpu.matmul %33, %26, %cst_10 {dimension_numbers = #tpu.dot_dimension_numbers<[1], [0], [0], [1], [0, 0, 1, 1], [], []>} : vector<16x64xf32>, vector<64x32xf32>, vector<16x32xf32> -> vector<16x32xf32>
    %36 = tpu.reciprocal %34 {approx = true} : vector<16x32xf32> -> vector<16x32xf32>
    %37 = arith.mulf %35, %36 : vector<16x32xf32>
    %c0_11 = arith.constant 0 : index
    %c384 = arith.constant 384 : index
    %38 = vector.load %arg1[%c0_11, %c384] : memref<32x768xf32, #tpu.memory_space<vmem>>, vector<32x32xf32>
    %cst_12 = arith.constant dense<0.000000e+00> : vector<16x32xf32>
    %39 = tpu.matmul %37, %38, %cst_12 {dimension_numbers = #tpu.dot_dimension_numbers<[1], [0], [0], [1], [0, 0, 1, 1], [], []>} : vector<16x32xf32>, vector<32x32xf32>, vector<16x32xf32> -> vector<16x32xf32>
    %40 = vector.shape_cast %3 : vector<32xf32> to vector<1x32xf32>
    %41 = vector.broadcast %40 : vector<1x32xf32> to vector<16x32xf32>
    %42 = arith.addf %39, %41 : vector<16x32xf32>
    %43 = arith.addf %0, %42 : vector<16x32xf32>
    %cst_13 = arith.constant dense<0.000000e+00> : vector<16xf32>
    %44 = vector.multi_reduction <add>, %43, %cst_13 [1] : vector<16x32xf32> to vector<16xf32>
    %45 = vector.shape_cast %44 : vector<16xf32> to vector<16x1xf32>
    %cst_14 = arith.constant 3.200000e+01 : f32
    %46 = vector.broadcast %cst_14 : f32 to vector<16x1xf32>
    %47 = arith.divf %45, %46 : vector<16x1xf32>
    %48 = vector.broadcast %47 : vector<16x1xf32> to vector<16x32xf32>
    %49 = arith.subf %43, %48 : vector<16x32xf32>
    %50 = arith.mulf %49, %49 : vector<16x32xf32>
    %cst_15 = arith.constant dense<0.000000e+00> : vector<16xf32>
    %51 = vector.multi_reduction <add>, %50, %cst_15 [1] : vector<16x32xf32> to vector<16xf32>
    %52 = vector.shape_cast %51 : vector<16xf32> to vector<16x1xf32>
    %cst_16 = arith.constant 3.200000e+01 : f32
    %53 = vector.broadcast %cst_16 : f32 to vector<16x1xf32>
    %54 = arith.divf %52, %53 : vector<16x1xf32>
    %55 = vector.broadcast %47 : vector<16x1xf32> to vector<16x32xf32>
    %56 = arith.subf %43, %55 : vector<16x32xf32>
    %cst_17 = arith.constant 9.99999974E-6 : f32
    %57 = vector.broadcast %cst_17 : f32 to vector<16x1xf32>
    %58 = arith.addf %54, %57 : vector<16x1xf32>
    %59 = math.rsqrt %58 : vector<16x1xf32>
    %60 = vector.broadcast %59 : vector<16x1xf32> to vector<16x32xf32>
    %61 = arith.mulf %56, %60 : vector<16x32xf32>
    %62 = vector.shape_cast %5 : vector<32xf32> to vector<1x32xf32>
    %63 = vector.broadcast %62 : vector<1x32xf32> to vector<16x32xf32>
    %64 = arith.mulf %61, %63 : vector<16x32xf32>
    %65 = vector.shape_cast %7 : vector<32xf32> to vector<1x32xf32>
    %66 = vector.broadcast %65 : vector<1x32xf32> to vector<16x32xf32>
    %67 = arith.addf %64, %66 : vector<16x32xf32>
    %c0_18 = arith.constant 0 : index
    %c512 = arith.constant 512 : index
    %68 = vector.load %arg1[%c0_18, %c512] : memref<32x768xf32, #tpu.memory_space<vmem>>, vector<32x128xf32>
    %cst_19 = arith.constant dense<0.000000e+00> : vector<16x128xf32>
    %69 = tpu.matmul %67, %68, %cst_19 {dimension_numbers = #tpu.dot_dimension_numbers<[1], [0], [0], [1], [0, 0, 1, 1], [], []>} : vector<16x32xf32>, vector<32x128xf32>, vector<16x128xf32> -> vector<16x128xf32>
    %70 = vector.shape_cast %9 : vector<128xf32> to vector<1x128xf32>
    %71 = vector.broadcast %70 : vector<1x128xf32> to vector<16x128xf32>
    %72 = arith.addf %69, %71 : vector<16x128xf32>
    %cst_20 = arith.constant 0.000000e+00 : f32
    %73 = vector.broadcast %cst_20 : f32 to vector<16x128xf32>
    %74 = arith.maximumf %72, %73 : vector<16x128xf32>
    %c0_21 = arith.constant 0 : index
    %c640 = arith.constant 640 : index
    %75 = vector.load %arg1[%c0_21, %c640] : memref<32x768xf32, #tpu.memory_space<vmem>>, vector<32x128xf32>
    %cst_22 = arith.constant dense<0.000000e+00> : vector<16x32xf32>
    %76 = tpu.matmul %74, %75, %cst_22 {dimension_numbers = #tpu.dot_dimension_numbers<[1], [1], [0], [0], [0, 0, 1, 0], [], []>} : vector<16x128xf32>, vector<32x128xf32>, vector<16x32xf32> -> vector<16x32xf32>
    %77 = vector.shape_cast %11 : vector<32xf32> to vector<1x32xf32>
    %78 = vector.broadcast %77 : vector<1x32xf32> to vector<16x32xf32>
    %79 = arith.addf %76, %78 : vector<16x32xf32>
    %80 = arith.addf %67, %79 : vector<16x32xf32>
    %cst_23 = arith.constant dense<0.000000e+00> : vector<16xf32>
    %81 = vector.multi_reduction <add>, %80, %cst_23 [1] : vector<16x32xf32> to vector<16xf32>
    %82 = vector.shape_cast %81 : vector<16xf32> to vector<16x1xf32>
    %cst_24 = arith.constant 3.200000e+01 : f32
    %83 = vector.broadcast %cst_24 : f32 to vector<16x1xf32>
    %84 = arith.divf %82, %83 : vector<16x1xf32>
    %85 = vector.broadcast %84 : vector<16x1xf32> to vector<16x32xf32>
    %86 = arith.subf %80, %85 : vector<16x32xf32>
    %87 = arith.mulf %86, %86 : vector<16x32xf32>
    %cst_25 = arith.constant dense<0.000000e+00> : vector<16xf32>
    %88 = vector.multi_reduction <add>, %87, %cst_25 [1] : vector<16x32xf32> to vector<16xf32>
    %89 = vector.shape_cast %88 : vector<16xf32> to vector<16x1xf32>
    %cst_26 = arith.constant 3.200000e+01 : f32
    %90 = vector.broadcast %cst_26 : f32 to vector<16x1xf32>
    %91 = arith.divf %89, %90 : vector<16x1xf32>
    %92 = vector.broadcast %84 : vector<16x1xf32> to vector<16x32xf32>
    %93 = arith.subf %80, %92 : vector<16x32xf32>
    %cst_27 = arith.constant 9.99999974E-6 : f32
    %94 = vector.broadcast %cst_27 : f32 to vector<16x1xf32>
    %95 = arith.addf %91, %94 : vector<16x1xf32>
    %96 = math.rsqrt %95 : vector<16x1xf32>
    %97 = vector.broadcast %96 : vector<16x1xf32> to vector<16x32xf32>
    %98 = arith.mulf %93, %97 : vector<16x32xf32>
    %99 = vector.shape_cast %13 : vector<32xf32> to vector<1x32xf32>
    %100 = vector.broadcast %99 : vector<1x32xf32> to vector<16x32xf32>
    %101 = arith.mulf %98, %100 : vector<16x32xf32>
    %102 = vector.shape_cast %15 : vector<32xf32> to vector<1x32xf32>
    %103 = vector.broadcast %102 : vector<1x32xf32> to vector<16x32xf32>
    %104 = arith.addf %101, %103 : vector<16x32xf32>
    %c0_28 = arith.constant 0 : index
    %c0_29 = arith.constant 0 : index
    %105 = vector.load %arg3[%c0_28, %c0_29] : memref<16x32xf32, #tpu.memory_space<vmem>>, vector<16x32xf32>
    tpu.vector_store %arg3[%c0_28, %c0_29], %104 {strides = array<i32>} : memref<16x32xf32, #tpu.memory_space<vmem>>, vector<16x32xf32>,
    return
  }
}

</mosaic_0001>

<bundles_post_ra>
// kernel: block_forward.1
= control target key start
LH: loop header
LB: loop body
LE: loop exit
PB: predicated region body
PF: predicated region fallthrough
CT: control target
= control target key end

     0   :  { %8 = vsyncpa [#allocation3], 0  ;;  %s1434_s0 = inlined_call_operand.hbm [shape: f32[16,32], index: 0, kind: input, shape index: {}]   ;;  %s1435_s1 = inlined_call_operand.hbm [shape: f32[32,768], index: 1, kind: input, shape index: {}]   ;;  %s1436_s2 = inlined_call_operand.hbm [shape: f32[88,128], index: 2, kind: input, shape index: {}]   ;;  %s1437_s3 = inlined_call_operand.hbm [shape: f32[16,32], index: 3, kind: output, shape index: {}]  }
   0x1   :  { %9 = vsyncpa [#allocation6], 0 }
   0x2   :  { %10 = vsyncpa [#allocation4], 0  ;;  %s1292_s12 = smov [#allocation5]   ;;  %s1198_s16 = scalar_lea.hbm %s1435_s1, 3072 }
   0x3   :  { %s28_s13 = sshll.u32 %s1292_s12, 4  ;;  %p1199_p0 = scmp.ne.s32.totalorder %s1435_s1, %s1198_s16  ;;  %s29_s13 = int_to_ptr.vmem [resolvable:$true] %s28_s13 }
   0x4   :  { %p1202_p1 = scmp.lt.u32.totalorder %s1198_s16, %s1435_s1 }
   0x6   :  { %p1204_p2 = pnand %p1202_p1, %p1199_p0 }
   0x8   :  { %1207 = shalt.err (!%p1204_p2)
}
   0x9   :  { %s1208_s21 = scalar_lea.vmem %s29_s13, 3072  ;;  %p1213_p4 = scmp.lt.s32.totalorder %s29_s13, %s29_s13 }
   0xa   :  { %p1209_p3 = scmp.ne.s32.totalorder %s29_s13, %s1208_s21  ;;  %p1214_p5 = scmp.lt.s32.totalorder %s1208_s21, %s1208_s21 }
   0xc   :  { %p1215_p6 = por %p1214_p5, %p1213_p4 }
   0xe   :  { %p1216_p7 = pnand %p1215_p6, %p1209_p3 }
  0x10   :  { %1219 = shalt.err (!%p1216_p7)
}
  0x11   :  { %s1293_s22 = smov 768   ;;  %s1294_s23 = smov 48  }
  0x12   :  { %34 = dma.hbm_to_vmem [thread:$0]  %s1435_s1, 3072, %s29_s13, [#allocation6], %s1293_s22, %s1293_s22, %s1294_s23  }
  0x13   :  { %s1295_s26 = smov [#allocation2]   ;;  %s1220_s30 = scalar_lea.hbm %s1434_s0, 256 }
  0x14   :  { %s16_s27 = sshll.u32 %s1295_s26, 4  ;;  %p1221_p8 = scmp.ne.s32.totalorder %s1434_s0, %s1220_s30  ;;  %s17_s27 = int_to_ptr.vmem [resolvable:$true] %s16_s27 }
  0x15   :  { %p1224_p9 = scmp.lt.u32.totalorder %s1220_s30, %s1434_s0 }
  0x17   :  { %p1226_p10 = pnand %p1224_p9, %p1221_p8 }
  0x19   :  { %1229 = shalt.err (!%p1226_p10)
}
  0x1a   :  { %s1230_s8 = scalar_lea.vmem %s17_s27, 256  ;;  %p1235_p12 = scmp.lt.s32.totalorder %s17_s27, %s17_s27 }
  0x1b   :  { %p1231_p11 = scmp.ne.s32.totalorder %s17_s27, %s1230_s8  ;;  %p1236_p13 = scmp.lt.s32.totalorder %s1230_s8, %s1230_s8 }
  0x1d   :  { %p1237_p0 = por %p1236_p13, %p1235_p12 }
  0x1f   :  { %p1238_p1 = pnand %p1237_p0, %p1231_p11 }
  0x21   :  { %1241 = shalt.err (!%p1238_p1)
}
  0x22   :  { %s1296_s1 = smov 128   ;;  %s1297_s9 = smov 8  }
  0x23   :  { %22 = dma.hbm_to_vmem [thread:$0]  %s1434_s0, 256, %s17_s27, [#allocation3], %s1296_s1, %s1296_s1, %s1297_s9  }
  0x24   :  { %s1298_s12 = smov [#allocation7]   ;;  %s1242_s16 = scalar_lea.hbm %s1436_s2, 1408 }
  0x25   :  { %s40_s13 = sshll.u32 %s1298_s12, 4  ;;  %p1243_p2 = scmp.ne.s32.totalorder %s1436_s2, %s1242_s16  ;;  %s41_s13 = int_to_ptr.vmem [resolvable:$true] %s40_s13 }
  0x26   :  { %p1246_p3 = scmp.lt.u32.totalorder %s1242_s16, %s1436_s2 }
  0x28   :  { %p1248_p4 = pnand %p1246_p3, %p1243_p2 }
  0x2a   :  { %1251 = shalt.err (!%p1248_p4)
}
  0x2b   :  { %s1252_s21 = scalar_lea.vmem %s41_s13, 1408  ;;  %p1257_p6 = scmp.lt.s32.totalorder %s41_s13, %s41_s13 }
  0x2c   :  { %p1253_p5 = scmp.ne.s32.totalorder %s41_s13, %s1252_s21  ;;  %p1258_p7 = scmp.lt.s32.totalorder %s1252_s21, %s1252_s21 }
  0x2e   :  { %p1259_p8 = por %p1258_p7, %p1257_p6 }
  0x30   :  { %p1260_p9 = pnand %p1259_p8, %p1253_p5 }
  0x32   :  { %1263 = shalt.err (!%p1260_p9)
}
  0x33   :  { %46 = dma.hbm_to_vmem [thread:$0]  %s1436_s2, 1408, %s41_s13, [#allocation6], %s1296_s1, %s1296_s1, %s1297_s9  }
  0x34   :  { %1286 = dma.done.wait [#allocation3], 256  }
  0x35   :  { %1287 = vsyncadd [#allocation3], 4294967040 }
  0x36   :  { %1288 = dma.done.wait [#allocation6], 4480  }
  0x37   :  { %1289 = vsyncadd [#allocation6], 4294962816  ;;  %v1299_v0 = vmov 0.0   ;;  %v70_v1 = vld [vmem:[#allocation5 + $0x8] sm:$0xff]  ;;  %v73_v2 = vld [vmem:[#allocation5 + $0x38] sm:$0xff]  ;;  %vm81_vm0 = vcmask 261120  }
  0x38   :  { %152 = vmatprep.mubr.f32.mxu1 %v1299_v0  ;;  %v69_v3 = vld [vmem:[#allocation5] sm:$0xff]  ;;  %v1077_v4 = vpack.c.bf16 %v73_v2, %v70_v1  ;;  %v72_v5 = vld [vmem:[#allocation5 + $0x30] sm:$0xff]  ;;  %v76_v6 = vld [vmem:[#allocation5 + $0x68] sm:$0xff]  ;;  %vm361_vm2 = vcmask 523264   ;;  %s1300_s2 = smov [#allocation8]  }
  0x39   :  { %v79_v7 = vld [vmem:[#allocation5 + $0x98] sm:$0xff]  ;;  %v1079_v8 = vpack.c.bf16 %v72_v5, %v69_v3  ;;  %v75_v10 = vld [vmem:[#allocation5 + $0x60] sm:$0xff]  ;;  %v78_v11 = vld [vmem:[#allocation5 + $0x90] sm:$0xff]  ;;  %s887_s23 = sshll.u32 %s1300_s2, 4  ;;  %s888_s23 = int_to_ptr.vmem [resolvable:$true] %s887_s23 }
  0x3a   :  { %v1081_v9 = vpack.c.bf16 %v79_v7, %v76_v6  ;;  %1078 = vmatprep.subr.bf16.mxu1 %v1077_v4  ;;  %v1083_v12 = vpack.c.bf16 %v78_v11, %v75_v10  ;;  %v1363_v13 = vld [vmem:[#allocation2] sm:$0xff]  ;;  %v1367_v14 = vld [vmem:[#allocation2 + $0x8] sm:$0xff]  ;;  %v74_v16 = vld [vmem:[#allocation5 + $0x40] sm:$0xff]  ;;  %s1264_s24 = scalar_lea.vmem %s888_s23, 256  ;;  %p1269_p11 = scmp.lt.s32.totalorder %s888_s23, %s888_s23 }
  0x3b   :  { %1080 = vmatpush1.bf16.msra.mxu1 %v1079_v8  ;;  %v71_v15 = vld [vmem:[#allocation5 + $0x10] sm:$0xff]  ;;  %v80_v19 = vld [vmem:[#allocation5 + $0xa0] sm:$0xff]  ;;  %v63_v22 = vld [vmem:[#allocation7 + $0x28] sm:$0xff]  ;;  %p1265_p10 = scmp.ne.s32.totalorder %s888_s23, %s1264_s24  ;;  %p1270_p12 = scmp.lt.s32.totalorder %s1264_s24, %s1264_s24 }
  0x3c   :  { %1082 = vmatprep.subr.bf16.mxu1 %v1081_v9  ;;  %v77_v17 = vld [vmem:[#allocation5 + $0x70] sm:$0xff]  ;;  %v1085_v18 = vpack.c.bf16 %v74_v16, %v71_v15  ;;  %v65_v23 = vld [vmem:[#allocation7 + $0x38] sm:$0xff]  ;;  %v67_v25 = vld [vmem:[#allocation7 + $0x48] sm:$0xff] }
  0x3d   :  { %v1089_v20 = vpack.c.bf16 %v80_v19, %v77_v17  ;;  %v64_v26 = vld [vmem:[#allocation7 + $0x30] sm:$0xff]  ;;  %v61_v27 = vld [vmem:[#allocation7 + $0x18] sm:$0xff]  ;;  %v66_v28 = vld [vmem:[#allocation7 + $0x40] sm:$0xff]  ;;  %p1271_p13 = por %p1270_p12, %p1269_p11 }
  0x3e   :  { %v68_v29 = vld [vmem:[#allocation7 + $0x50] sm:$0xff]  ;;  %v62_v30 = vld [vmem:[#allocation7 + $0x20] sm:$0xff]  ;;  %vm1094_vm1 = vmpackc.low %vm81_vm0, %vm81_vm0  ;;  %v1121_v50 = vpack.c.bf16 %v64_v26, %v63_v22  ;;  %v1125_v51 = vpack.c.bf16 %v66_v28, %v65_v23 }
  0x3f   :  { %1084 = vmatpush1.bf16.msra.mxu1 %v1083_v12  ;;  %v1117_v49 = vpack.c.bf16 %v62_v30, %v61_v27  ;;  %v1129_v54 = vpack.c.bf16 %v68_v29, %v67_v25  ;;  %v59_v9 = vld [vmem:[#allocation7 + $0x8] sm:$0xff]  ;;  %v60_v12 = vld [vmem:[#allocation7 + $0x10] sm:$0xff]  ;;  %v536_v17 = vld [vmem:[#allocation5 + $0x18] sm:$0xff]  ;;  %p1272_p0 = pnand %p1271_p13, %p1265_p10 }
  0x40   :  { %1086 = vmatprep.subr.bf16.mxu1 %v1085_v18 }
  0x42   :  { %900 = vmatmul.mubr.msk.f32.vlgmr.msra.gmra.mrb[0].mxu1 %vm81_vm0, %v1363_v13 }
  0x43   :  { %158 = vmatprep.mubr.f32.mxu1 %v1299_v0  ;;  %1088 = vmatpush3.bf16.msra.mxu1 %v1085_v18  ;;  %v537_v18 = vld [vmem:[#allocation5 + $0x48] sm:$0xff] }
  0x44   :  { %1090 = vmatprep.subr.bf16.mxu1 %v1089_v20  ;;  %v1149_v19 = vpack.c.bf16 %v537_v18, %v536_v17 }
  0x46   :  { %901 = vmatmul.mubr.msk.f32.gmra.mrb[2].mxu1 %vm81_vm0, %v1367_v14 }
  0x47   :  { %984 = vmatprep.mubr.msk.f32.mxu1 %vm81_vm0, %v1363_v13  ;;  %1092 = vmatpush3.bf16.msra.mxu1 %v1089_v20  ;;  %v538_v20 = vld [vmem:[#allocation5 + $0x78] sm:$0xff] }
  0x48   :  { %1118 = vmatprep.subr.bf16.mxu1 %v1117_v49 }
  0x4a   :  { %985 = vmatmul.mubr.msk.f32.vlgmr.msra.gmra.mrb[4].mxu1 %vm81_vm0, %v1367_v14 }
  0x4b   :  { %1120 = vmatpush3.bf16.msra.mxu1 %v1117_v49 }
  0x4c   :  { %1122 = vmatprep.subr.bf16.mxu1 %v1121_v50 }
  0x4f   :  { %1124 = vmatpush3.bf16.msra.mxu1 %v1121_v50 }
  0x50   :  { %1126 = vmatprep.subr.bf16.mxu1 %v1125_v51 }
  0x53   :  { %1128 = vmatpush3.bf16.msra.mxu1 %v1125_v51 }
  0x54   :  { %1130 = vmatprep.subr.bf16.mxu1 %v1129_v54 }
  0x57   :  { %1132 = vmatpush3.bf16.msra.mxu1 %v1129_v54 }
 0x115   :  { %v154_v21 = vpop.f32.mrb[0].mxu1 }
 0x116   :  { %v156_v24 = vpop.f32.mrb[1].mxu1  ;;  %1003 = vmatprep.mubr.msk.f32.mxu0 %vm81_vm0, %v154_v21  ;;  %v539_v21 = vld [vmem:[#allocation5 + $0xa8] sm:$0xff] }
 0x117   :  { %v242_v32 = vmul.f32 %v156_v24, %v63_v22  ;;  %v244_v33 = vmul.f32 %v156_v24, %v65_v23  ;;  %v246_v34 = vmul.f32 %v156_v24, %v67_v25  ;;  %v240_v36 = vmul.f32 %v156_v24, %v61_v27 }
 0x119   :  { %v160_v31 = vpop.f32.mrb[2].mxu1 }
 0x11a   :  { %v162_v35 = vpop.f32.mrb[3].mxu1 }
 0x11b   :  { %v243_v37 = vmul.f32 %v162_v35, %v64_v26  ;;  %v245_v38 = vmul.f32 %v162_v35, %v66_v28  ;;  %v247_v39 = vmul.f32 %v162_v35, %v68_v29  ;;  %v241_v40 = vmul.f32 %v162_v35, %v62_v30 }
 0x11d   :  { %v1093_v41 = vpack.c.bf16 %v241_v40, %v240_v36  ;;  %v1099_v42 = vpack.c.bf16 %v243_v37, %v242_v32  ;;  %v1105_v43 = vpack.c.bf16 %v245_v38, %v244_v33  ;;  %v1111_v44 = vpack.c.bf16 %v247_v39, %v246_v34  ;;  %v986_v52 = vpop.f32.mrb[4].mxu1  ;;  %v1390_v34 = vld [vmem:[#allocation7] sm:$0xff] }
 0x11e   :  { %v231_v53 = vpop.f32.mrb[5].mxu1  ;;  %v249_v55 = vmul.f32 %v986_v52, %v62_v30  ;;  %v251_v56 = vmul.f32 %v986_v52, %v64_v26  ;;  %v253_v57 = vmul.f32 %v986_v52, %v66_v28  ;;  %v255_v59 = vmul.f32 %v986_v52, %v68_v29 }
 0x11f   :  { %1095 = vmatprep.subr.msk.bf16.mxu0 %vm1094_vm1, %v1093_v41  ;;  %v248_v58 = vmul.f32 %v231_v53, %v61_v27  ;;  %v250_v60 = vmul.f32 %v231_v53, %v63_v22  ;;  %v252_v61 = vmul.f32 %v231_v53, %v65_v23  ;;  %v254_v62 = vmul.f32 %v231_v53, %v67_v25  ;;  %v666_v53 = vld [vmem:[#allocation5 + $0x20] sm:$0xff] }
 0x120   :  { %1098 = vmatpush3.bf16.xpose.msk.msra.mxu0 %vm1094_vm1, %v1093_v41  ;;  %v1153_v22 = vpack.c.bf16 %v539_v21, %v538_v20 }
 0x121   :  { %1101 = vmatprep.subr.msk.bf16.mxu0 %vm1094_vm1, %v1099_v42  ;;  %v1133_v63 = vpack.c.bf16 %v249_v55, %v248_v58  ;;  %v1137_v0 = vpack.c.bf16 %v251_v56, %v250_v60  ;;  %v1141_v1 = vpack.c.bf16 %v253_v57, %v252_v61  ;;  %v1145_v2 = vpack.c.bf16 %v255_v59, %v254_v62  ;;  %v668_v55 = vld [vmem:[#allocation5 + $0x80] sm:$0xff]  ;;  %v669_v56 = vld [vmem:[#allocation5 + $0xb0] sm:$0xff]  ;;  %v757_v58 = vld [vmem:[#allocation5 + $0x28] sm:$0xff] }
 0x122   :  { %v1161_v57 = vpack.c.bf16 %v669_v56, %v668_v55  ;;  %v758_v59 = vld [vmem:[#allocation5 + $0x58] sm:$0xff]  ;;  %v759_v60 = vld [vmem:[#allocation5 + $0x88] sm:$0xff] }
 0x123   :  { %1134 = vmatprep.subr.bf16.mxu1 %v1133_v63  ;;  %v1165_v61 = vpack.c.bf16 %v758_v59, %v757_v58  ;;  %v760_v62 = vld [vmem:[#allocation5 + $0xb8] sm:$0xff] }
 0x128   :  { %1104 = vmatpush3.bf16.xpose.msk.msra.mxu0 %vm1094_vm1, %v1099_v42 }
 0x129   :  { %1107 = vmatprep.subr.msk.bf16.mxu0 %vm1094_vm1, %v1105_v43 }
 0x130   :  { %1110 = vmatpush3.bf16.xpose.msk.msra.mxu0 %vm1094_vm1, %v1105_v43 }
 0x131   :  { %1113 = vmatprep.subr.msk.bf16.mxu0 %vm1094_vm1, %v1111_v44 }
 0x138   :  { %1116 = vmatpush3.bf16.xpose.msk.msra.mxu0 %vm1094_vm1, %v1111_v44 }
 0x139   :  { %1150 = vmatprep.subr.bf16.mxu0 %v1149_v19 }
 0x13f   :  { %1004 = vmatmul.mubr.msk.f32.vlgmr.msra.gmra.mrb[0].mxu0 %vm81_vm0, %v160_v31  ;;  %v540_v31 = vlaneseq }
 0x140   :  { %1152 = vmatpush3.bf16.msra.mxu0 %v1149_v19 }
 0x141   :  { %1154 = vmatprep.subr.bf16.mxu0 %v1153_v22  ;;  %v1387_v32 = vshrl.u32 %v540_v31, 7 }
 0x143   :  { %v542_v33 = vsub.s32 0, %v1387_v32  ;;  %v672_v20 = vsub.s32 3, %v1387_v32  ;;  %v876_v55 = vsub.s32 6, %v1387_v32 }
 0x144   :  { %1156 = vmatpush3.bf16.msra.mxu0 %v1153_v22 }
 0x145   :  { %v543_v35 = vrot.slane %v1390_v34, %v542_v33  ;;  %1166 = vmatprep.subr.bf16.mxu0 %v1165_v61  ;;  %v673_v21 = vrot.slane %v1390_v34, %v672_v20 }
 0x212   :  { %v1005_v45 = vpop.f32.mrb[0].mxu0 }
 0x213   :  { %v352_v46 = vpop.f32.mrb[1].mxu0  ;;  %v365_v48 = vsel %vm361_vm2, %v1005_v45, -inf }
 0x214   :  { %v362_v47 = vsel %vm361_vm2, %v352_v46, -inf }
 0x215   :  { %363 = vmax.xlane.f32.xlu0 %v362_v47 }
 0x219   :  { %366 = vmax.xlane.f32.xlu0 %v365_v48 }
 0x2a2   :  { %v364_v3 = vpop.xlane.xlu0 %363 }
 0x2a3   :  { %v368_v4 = vsub.f32 %v352_v46, %v364_v3 }
 0x2a5   :  { %v370_v5 = vmul.f32 1.442695, %v368_v4 }
 0x2a6   :  { %v367_v6 = vpop.xlane.xlu0 %366 }
 0x2a7   :  { %1182 = vpow2.f32 %v370_v5  ;;  %v369_v7 = vsub.f32 %v1005_v45, %v367_v6  ;;  %v656_v6 = vsub.s32 1, %v1387_v32 }
 0x2a9   :  { %v372_v8 = vmul.f32 1.442695, %v369_v7  ;;  %v662_v7 = vsub.s32 2, %v1387_v32 }
 0x2ab   :  { %1184 = vpow2.f32 %v372_v8  ;;  %v657_v8 = vrot.slane %v1390_v34, %v656_v6 }
 0x2b1   :  { %v1183_v10 = vpop.eup %1182 }
 0x2b2   :  { %v374_v11 = vmul.f32 %v1183_v10, %v59_v9 }
 0x2b4   :  { %1022 = vmatprep.mubr.msk.f32.mxu1 %vm361_vm2, %v374_v11 }
 0x2b5   :  { %v1185_v15 = vpop.eup %1184 }
 0x2b6   :  { %v375_v16 = vmul.f32 %v1185_v15, %v60_v12 }
 0x2b8   :  { %1023 = vmatmul.mubr.msk.f32.vlgmr.msra.gmra.mrb[6].mxu1 %vm361_vm2, %v375_v16 }
 0x2b9   :  { %1136 = vmatpush3.bf16.msra.mxu1 %v1133_v63  ;;  %1041 = vmatprep.mubr.msk.f32.mxu1 %vm361_vm2, %v374_v11  ;;  %v1169_v63 = vpack.c.bf16 %v760_v62, %v759_v60  ;;  %v663_v11 = vrot.slane %v1390_v34, %v662_v7  ;;  %v877_v60 = vrot.slane %v1390_v34, %v876_v55 }
 0x2ba   :  { %1138 = vmatprep.subr.bf16.mxu1 %v1137_v0 }
 0x2bd   :  { %1140 = vmatpush3.bf16.msra.mxu1 %v1137_v0 }
 0x2be   :  { %1142 = vmatprep.subr.bf16.mxu1 %v1141_v1 }
 0x2c1   :  { %1144 = vmatpush3.bf16.msra.mxu1 %v1141_v1 }
 0x2c2   :  { %1146 = vmatprep.subr.bf16.mxu1 %v1145_v2 }
 0x2c5   :  { %1148 = vmatpush3.bf16.msra.mxu1 %v1145_v2 }
 0x2c8   :  { %1042 = vmatmul.mubr.msk.f32.vlgmr.msra.gmra.mrb[8].mxu1 %vm361_vm2, %v375_v16 }
 0x38b   :  { %v1024_v23 = vpop.f32.mrb[6].mxu1 }
 0x38c   :  { %v448_v24 = vpop.f32.mrb[7].mxu1  ;;  %1186 = vrcp.f32 %v1024_v23 }
 0x38d   :  { %1188 = vrcp.f32 %v448_v24 }
 0x396   :  { %v1187_v25 = vpop.eup %1186 }
 0x397   :  { %v1189_v27 = vpop.eup %1188 }
 0x39b   :  { %v1043_v26 = vpop.f32.mrb[8].mxu1 }
 0x39c   :  { %v535_v28 = vmul.f32 %v1187_v25, %v1043_v26  ;;  %v523_v29 = vpop.f32.mrb[9].mxu1 }
 0x39d   :  { %v534_v30 = vmul.f32 %v1189_v27, %v523_v29 }
 0x39f   :  { %1052 = vmatprep.mubr.msk.f32.mxu0 %vm81_vm0, %v534_v30 }
 0x3a0   :  { %1053 = vmatmul.mubr.msk.f32.vlgmr.msra.gmra.mrb[2].mxu0 %vm81_vm0, %v535_v28  ;;  %v763_v28 = vsub.s32 4, %v1387_v32 }
 0x3a1   :  { %1168 = vmatpush3.bf16.xpose.msra.mxu0 %v1165_v61 }
 0x3a2   :  { %1170 = vmatprep.subr.bf16.mxu0 %v1169_v63  ;;  %v764_v29 = vrot.slane %v1390_v34, %v763_v28 }
 0x3a9   :  { %1172 = vmatpush3.bf16.xpose.msra.mxu0 %v1169_v63 }
 0x473   :  { %v1054_v36 = vpop.f32.mrb[2].mxu0 }
 0x474   :  { %v616_v37 = vpop.f32.mrb[3].mxu0  ;;  %v622_v38 = vadd.f32 %v1054_v36, %v543_v35 }
 0x475   :  { %v617_v39 = vadd.f32 %v616_v37, %v543_v35 }
 0x476   :  { %v626_v42 = vadd.f32 %v622_v38, %v1367_v14  ;;  %v667_v14 = vld [vmem:[#allocation5 + $0x50] sm:$0xff] }
 0x477   :  { %v625_v40 = vadd.f32 %v617_v39, %v1363_v13  ;;  %v1157_v54 = vpack.c.bf16 %v667_v14, %v666_v53 }
 0x478   :  { %v630_v43 = vsel %vm81_vm0, %v626_v42, 0.0 }
 0x479   :  { %v627_v41 = vsel %vm81_vm0, %v625_v40, 0.0  ;;  %1158 = vmatprep.subr.bf16.mxu1 %v1157_v54 }
 0x47a   :  { %628 = vadd.xlane.f32.xlu1 %v627_v41  ;;  %1160 = vmatpush3.bf16.msra.mxu1 %v1157_v54  ;;  %v870_v54 = vsub.s32 5, %v1387_v32 }
 0x47b   :  { %1162 = vmatprep.subr.bf16.mxu1 %v1161_v57 }
 0x47c   :  { %v871_v56 = vrot.slane %v1390_v34, %v870_v54 }
 0x47e   :  { %631 = vadd.xlane.f32.xlu1 %v630_v43  ;;  %1164 = vmatpush3.bf16.msra.mxu1 %v1161_v57 }
 0x507   :  { %v629_v44 = vpop.xlane.xlu1 %628 }
 0x508   :  { %v634_v45 = vmul.f32 0.03125, %v629_v44 }
 0x50a   :  { %v636_v46 = vsub.f32 %v625_v40, %v634_v45 }
 0x50b   :  { %v632_v47 = vpop.xlane.xlu1 %631 }
 0x50c   :  { %v635_v48 = vmul.f32 0.03125, %v632_v47  ;;  %v638_v49 = vmul.f32 %v636_v46, %v636_v46 }
 0x50e   :  { %v637_v50 = vsub.f32 %v626_v42, %v635_v48  ;;  %v640_v51 = vsel %vm81_vm0, %v638_v49, 0.0 }
 0x50f   :  { %641 = vadd.xlane.f32.xlu0 %v640_v51 }
 0x510   :  { %v639_v52 = vmul.f32 %v637_v50, %v637_v50 }
 0x512   :  { %v643_v13 = vsel %vm81_vm0, %v639_v52, 0.0 }
 0x513   :  { %644 = vadd.xlane.f32.xlu1 %v643_v13 }
 0x59c   :  { %v642_v0 = vpop.xlane.xlu0 %641 }
 0x59d   :  { %v646_v1 = vmul.f32 0.03125, %v642_v0 }
 0x59f   :  { %v648_v2 = vadd.f32 1e-05, %v646_v1 }
 0x5a0   :  { %v645_v3 = vpop.xlane.xlu1 %644 }
 0x5a1   :  { %1190 = vrsqrt.f32 %v648_v2  ;;  %v647_v4 = vmul.f32 0.03125, %v645_v3 }
 0x5a3   :  { %v649_v5 = vadd.f32 1e-05, %v647_v4 }
 0x5a5   :  { %1192 = vrsqrt.f32 %v649_v5 }
 0x5ab   :  { %v1191_v9 = vpop.eup %1190 }
 0x5ac   :  { %v652_v10 = vmul.f32 %v1191_v9, %v636_v46 }
 0x5ae   :  { %v658_v12 = vmul.f32 %v657_v8, %v652_v10 }
 0x5af   :  { %v1193_v15 = vpop.eup %1192 }
 0x5b0   :  { %v653_v16 = vmul.f32 %v1193_v15, %v637_v50  ;;  %v664_v17 = vadd.f32 %v663_v11, %v658_v12 }
 0x5b2   :  { %v659_v18 = vmul.f32 %v657_v8, %v653_v16  ;;  %1063 = vmatprep.mubr.msk.f32.mxu1 %vm81_vm0, %v664_v17 }
 0x5b4   :  { %v665_v19 = vadd.f32 %v663_v11, %v659_v18 }
 0x5b6   :  { %1064 = vmatmul.mubr.msk.f32.vlgmr.msra.gmra.mrb[10].mxu1 %vm81_vm0, %v665_v19 }
 0x689   :  { %v1065_v22 = vpop.f32.mrb[10].mxu1 }
 0x68a   :  { %v752_v23 = vadd.f32 %v1065_v22, %v673_v21  ;;  %v746_v24 = vpop.f32.mrb[11].mxu1 }
 0x68b   :  { %v747_v25 = vadd.f32 %v746_v24, %v673_v21 }
 0x68c   :  { %v756_v27 = vmax.f32 %v752_v23, 0.0 }
 0x68d   :  { %v755_v26 = vmax.f32 %v747_v25, 0.0 }
 0x68f   :  { %1074 = vmatprep.mubr.f32.mxu0 %v755_v26 }
 0x690   :  { %1075 = vmatmul.mubr.f32.vlgmr.msra.gmra.mrb[4].mxu0 %v756_v27 }
 0x763   :  { %v1076_v30 = vpop.f32.mrb[4].mxu0 }
 0x764   :  { %v837_v31 = vadd.f32 %v1076_v30, %v764_v29  ;;  %v831_v33 = vpop.f32.mrb[5].mxu0 }
 0x765   :  { %v832_v35 = vadd.f32 %v831_v33, %v764_v29 }
 0x766   :  { %v841_v36 = vadd.f32 %v837_v31, %v665_v19 }
 0x767   :  { %v840_v37 = vadd.f32 %v832_v35, %v664_v17 }
 0x768   :  { %v845_v38 = vsel %vm81_vm0, %v841_v36, 0.0 }
 0x769   :  { %846 = vadd.xlane.f32.xlu1 %v845_v38  ;;  %v842_v39 = vsel %vm81_vm0, %v840_v37, 0.0 }
 0x76a   :  { %843 = vadd.xlane.f32.xlu0 %v842_v39 }
 0x7f6   :  { %v847_v40 = vpop.xlane.xlu1 %846 }
 0x7f7   :  { %v849_v41 = vmul.f32 0.03125, %v847_v40  ;;  %v844_v42 = vpop.xlane.xlu0 %843 }
 0x7f8   :  { %v848_v43 = vmul.f32 0.03125, %v844_v42 }
 0x7f9   :  { %v851_v44 = vsub.f32 %v841_v36, %v849_v41 }
 0x7fa   :  { %v850_v45 = vsub.f32 %v840_v37, %v848_v43 }
 0x7fb   :  { %v853_v46 = vmul.f32 %v851_v44, %v851_v44 }
 0x7fc   :  { %v852_v47 = vmul.f32 %v850_v45, %v850_v45 }
 0x7fd   :  { %v857_v48 = vsel %vm81_vm0, %v853_v46, 0.0 }
 0x7fe   :  { %858 = vadd.xlane.f32.xlu1 %v857_v48  ;;  %v854_v49 = vsel %vm81_vm0, %v852_v47, 0.0 }
 0x7ff   :  { %855 = vadd.xlane.f32.xlu0 %v854_v49 }
 0x88b   :  { %v859_v50 = vpop.xlane.xlu1 %858 }
 0x88c   :  { %v861_v51 = vmul.f32 0.03125, %v859_v50  ;;  %v856_v52 = vpop.xlane.xlu0 %855 }
 0x88d   :  { %v860_v13 = vmul.f32 0.03125, %v856_v52 }
 0x88e   :  { %v863_v53 = vadd.f32 1e-05, %v861_v51 }
 0x88f   :  { %v862_v14 = vadd.f32 1e-05, %v860_v13 }
 0x890   :  { %1194 = vrsqrt.f32 %v863_v53 }
 0x891   :  { %1196 = vrsqrt.f32 %v862_v14 }
 0x89a   :  { %v1195_v57 = vpop.eup %1194 }
 0x89b   :  { %v1197_v58 = vpop.eup %1196  ;;  %v867_v59 = vmul.f32 %v1195_v57, %v851_v44 }
 0x89c   :  { %v866_v61 = vmul.f32 %v1197_v58, %v850_v45 }
 0x89d   :  { %v873_v62 = vmul.f32 %v871_v56, %v867_v59 }
 0x89e   :  { %v872_v63 = vmul.f32 %v871_v56, %v866_v61 }
 0x89f   :  { %v879_v0 = vadd.f32 %v877_v60, %v873_v62 }
 0x8a0   :  { %v878_v1 = vadd.f32 %v877_v60, %v872_v63 }
 0x8a1   :  { %881 = vst.msk [vmem:[#allocation8 + $0x8] sm:$0xff] %vm81_vm0, %v879_v0 }
 0x8a2   :  { %880 = vst.msk [vmem:[#allocation8] sm:$0xff] %vm81_vm0, %v878_v1 }
 0x8a3   :  { %1275 = shalt.err (!%p1272_p0)
}
 0x8a4   :  { %s1276_s27 = scalar_lea.hbm %s1437_s3, 256 }
 0x8a5   :  { %p1277_p1 = scmp.ne.s32.totalorder %s1437_s3, %s1276_s27  ;;  %p1280_p2 = scmp.lt.u32.totalorder %s1276_s27, %s1437_s3 }
 0x8a7   :  { %p1282_p3 = pnand %p1280_p2, %p1277_p1 }
 0x8a9   :  { %1285 = shalt.err (!%p1282_p3)
}
 0x8aa   :  { %893 = dma.vmem_to_hbm [thread:$0]  %s888_s23, 256, %s1437_s3, [#allocation4], %s1296_s1, %s1296_s1, %s1297_s9  }
 0x8ab   :  { %1290 = dma.done.wait [#allocation4], 256  }
 0x8ac   :  { %1291 = vsyncadd [#allocation4], 4294967040 }
 0x8ad   :  { %897 = vsyncpa [#allocation3], 1 }
 0x8ae   :  { %898 = vsyncpa [#allocation6], 1 }
 0x8af   :  { %899 = vsyncpa [#allocation4], 1 }

</bundles_post_ra>
